<compile_context>
chip_gen: v7x
topology: tpu7x:2x2x1
jax: 0.10.0
libtpu: 0.0.40
codegen_flags: <defaults>
</compile_context>

<pallas_src>
import jax
import jax.numpy as jnp
from jax.experimental import pallas as pl
from jax.experimental.pallas import tpu as pltpu


_TARGET_BLOCK_BYTES = 8 * 1024 * 1024    # ~8 MiB blocks (4 bufs -> ~32 MiB VMEM)
_VMEM_LIMIT_BYTES = 48 * 1024 * 1024     # raised scoped limit; fits v7x's 64 MiB
_MIN_PIPELINE_BYTES = 1 * 1024 * 1024    # force multi-block launches above this
_MIN_GRID_STEPS = 4                      # >= 2 per TensorCore on v7x


def _swish_kernel(x_ref, o_ref):
    # Compute in f32 (exp -> EUP, mul/add -> VPU); single cast at the store.
    x = x_ref[...].astype(jnp.float32)
    o_ref[...] = (x * jax.nn.sigmoid(x)).astype(o_ref.dtype)


def _sublane_align(dtype) -> int:
    # Sub-32-bit dtypes pack along sublanes: f32 -> 8, bf16 -> 16, int8 -> 32.
    return max(8, 32 // jnp.dtype(dtype).itemsize)


def _round_down(a: int, m: int) -> int:
    return (a // m) * m


def _pick_row_tile(rows: int, width: int, itemsize: int, sub: int,
                   target_block_bytes: int) -> int:
    """Sublane-aligned row tile.

    Guarantees >= _MIN_GRID_STEPS grid steps for arrays above
    _MIN_PIPELINE_BYTES so DMA/compute pipeline and dual-TC sharding kick in.
    VMEM footprint is sized with the lane-padded width (round up to 128).
    """
    vmem_width = ((width + 127) // 128) * 128
    rt_budget = max(sub, _round_down(target_block_bytes // (vmem_width * itemsize), sub))
    total_bytes = rows * width * itemsize
    if total_bytes < _MIN_PIPELINE_BYTES or rows <= sub:
        # Tiny array (or too few rows to split): a single/small grid is fine.
        return rows if rows <= rt_budget else rt_budget
    rt_cap = max(sub, _round_down(rows // _MIN_GRID_STEPS, sub))
    return max(sub, min(rt_budget, rt_cap))


def _launch(x2d: jax.Array, rt: int) -> jax.Array:
    rows, width = x2d.shape
    n = rows * width
    itemsize = jnp.dtype(x2d.dtype).itemsize
    cost = pl.CostEstimate(
        flops=3 * n,
        transcendentals=n,                 # one exp per element
        bytes_accessed=2 * n * itemsize,   # read + write, streaming
    )
    return pl.pallas_call(
        _swish_kernel,
        out_shape=jax.ShapeDtypeStruct((rows, width), x2d.dtype),
        grid_spec=pltpu.PrefetchScalarGridSpec(
            num_scalar_prefetch=0,
            grid=(pl.cdiv(rows, rt),),
            in_specs=[pl.BlockSpec((rt, width), lambda i: (i, 0))],
            out_specs=pl.BlockSpec((rt, width), lambda i: (i, 0)),
        ),
        compiler_params=pltpu.CompilerParams(
            dimension_semantics=("parallel",),
            vmem_limit_bytes=_VMEM_LIMIT_BYTES,
        ),
        cost_estimate=cost,
    )(x2d)


def swish_pallas(x: jax.Array, *, target_block_bytes: int = _TARGET_BLOCK_BYTES) -> jax.Array:
    """Elementwise swish on an arbitrarily shaped array via a Pallas kernel."""
    orig_shape = x.shape
    n = x.size
    if n == 0:
        return x
    itemsize = jnp.dtype(x.dtype).itemsize
    sub = _sublane_align(x.dtype)

    # Fast path: widest lane-dense slab width that divides numel exactly
    # -> zero-copy reshape both ways, no pad, no slice.
    width = None
    for w in (4096, 2048, 1024, 512, 256, 128):
        if n % w == 0:
            width = w
            break
    if width is not None:
        rows = n // width
        rt = _pick_row_tile(rows, width, itemsize, sub, target_block_bytes)
        out2d = _launch(x.reshape(rows, width), rt)        # zero-copy in/out
        return out2d.reshape(orig_shape)

    # numel % 128 != 0: keep the array's own trailing dim as the lane axis
    # (zero-copy reshape; blocks take the FULL last dim, so a non-128-divisible
    # width is legal).  Lane occupancy may be partial, but for a memory-bound
    # op this beats the ~3x HBM traffic of pad + kernel + slice.
    w = orig_shape[-1] if x.ndim >= 2 else n
    if 0 < w * itemsize <= target_block_bytes:
        rows = n // w
        rt = _pick_row_tile(rows, w, itemsize, sub, target_block_bytes)
        out2d = _launch(x.reshape(rows, w), rt)
        return out2d.reshape(orig_shape)

    # Last resort (huge, non-128-divisible trailing dim): pad the flat array to
    # the next multiple of 128 lanes (swish(0)=0), then slice the pad off.
    # TODO(synk): this path costs ~2 extra HBM passes; only hit for pathological shapes.
    lanes = 128
    rows = pl.cdiv(n, lanes)
    pad = rows * lanes - n
    x2d = jnp.pad(jnp.ravel(x), (0, pad)).reshape(rows, lanes)
    rt = _pick_row_tile(rows, lanes, itemsize, sub, target_block_bytes)
    out2d = _launch(x2d, rt)
    return out2d.reshape(-1)[:n].reshape(orig_shape)


def _ref_swish(x):
    return x * jax.nn.sigmoid(x)


if __name__ == "__main__":
    key = jax.random.PRNGKey(0)

    # Main check: NCHW conv-style activation (zero-copy lane-dense fast path).
    x = jax.random.normal(key, (2, 4, 16, 16), dtype=jnp.float32)
    y = jax.block_until_ready(swish_pallas(x))
    assert y.shape == x.shape and y.dtype == x.dtype
    assert jnp.allclose(y, _ref_swish(x), atol=1e-6, rtol=1e-6)

    # Multi-block path (grid >= 4): shrink the target block to force tiling.
    x2 = jax.random.normal(jax.random.PRNGKey(1), (2, 32, 64, 128), dtype=jnp.float32)
    y2 = jax.block_until_ready(swish_pallas(x2, target_block_bytes=256 * 1024))
    assert jnp.allclose(y2, _ref_swish(x2), atol=1e-6, rtol=1e-6)

    # Small odd-size (numel % 128 != 0): natural-layout path, single block.
    x3 = jax.random.normal(jax.random.PRNGKey(2), (3, 5, 7), dtype=jnp.float32)
    y3 = jax.block_until_ready(swish_pallas(x3))
    assert jnp.allclose(y3, _ref_swish(x3), atol=1e-6, rtol=1e-6)

    # Larger odd-size: natural-layout path with a multi-step grid (no pad/slice).
    x5 = jax.random.normal(jax.random.PRNGKey(4), (63, 64, 65), dtype=jnp.float32)
    y5 = jax.block_until_ready(swish_pallas(x5))
    assert jnp.allclose(y5, _ref_swish(x5), atol=1e-6, rtol=1e-6)

    # bf16: kernel upcasts to f32 internally, so tolerance can be tight.
    x4 = jax.random.normal(jax.random.PRNGKey(3), (2, 4, 16, 16), dtype=jnp.bfloat16)
    y4 = jax.block_until_ready(swish_pallas(x4))
    ref4 = _ref_swish(x4.astype(jnp.float32)).astype(jnp.bfloat16)
    assert y4.dtype == jnp.bfloat16
    assert jnp.allclose(y4.astype(jnp.float32), ref4.astype(jnp.float32), atol=1e-2, rtol=1e-2)

    print("KERNEL_OK")
</pallas_src>

<mosaic_0001>
module attributes {stable_mosaic.version = 11 : i64} {
  func.func @_swish_kernel(%arg0: i32, %arg1: memref<1x2048xf32, #tpu.memory_space<vmem>>, %arg2: memref<1x2048xf32, #tpu.memory_space<vmem>>) attributes {dimension_semantics = [#tpu.dimension_semantics<parallel>], iteration_bounds = array<i64: 1>, scalar_prefetch = 0 : i64, scratch_operands = 0 : i64, tpu.core_type = #tpu.core_type<tc>, window_params = [{transform_indices = @transform_0, window_bounds = array<i64: 1, 2048>}, {transform_indices = @transform_1, window_bounds = array<i64: 1, 2048>}]} {
    %c0 = arith.constant 0 : index
    %c0_0 = arith.constant 0 : index
    %0 = vector.load %arg1[%c0, %c0_0] : memref<1x2048xf32, #tpu.memory_space<vmem>>, vector<1x2048xf32>
    %1 = arith.negf %0 : vector<1x2048xf32>
    %2 = math.exp %1 : vector<1x2048xf32>
    %cst = arith.constant 1.000000e+00 : f32
    %3 = vector.broadcast %cst : f32 to vector<1x2048xf32>
    %4 = arith.addf %3, %2 : vector<1x2048xf32>
    %5 = arith.divf %3, %4 : vector<1x2048xf32>
    %6 = arith.mulf %0, %5 : vector<1x2048xf32>
    %c0_1 = arith.constant 0 : index
    %c0_2 = arith.constant 0 : index
    %7 = vector.load %arg2[%c0_1, %c0_2] : memref<1x2048xf32, #tpu.memory_space<vmem>>, vector<1x2048xf32>
    tpu.vector_store %arg2[%c0_1, %c0_2], %6 {strides = array<i32>} : memref<1x2048xf32, #tpu.memory_space<vmem>>, vector<1x2048xf32>,
    return
  }
  func.func @transform_0(%arg0: i32) -> (i32, i32) {
    %c0_i32 = arith.constant 0 : i32
    %c0_i32_0 = arith.constant 0 : i32
    return %arg0, %c0_i32 : i32, i32
  }
  func.func @transform_1(%arg0: i32) -> (i32, i32) {
    %c0_i32 = arith.constant 0 : i32
    %c0_i32_0 = arith.constant 0 : i32
    return %arg0, %c0_i32 : i32, i32
  }
}

</mosaic_0001>

<bundles_post_ra>
// kernel: tpu_custom_call.1
= control target key start
LH: loop header
LB: loop body
LE: loop exit
PB: predicated region body
PF: predicated region fallthrough
CT: control target
= control target key end

     0   :  { %6 = vsyncpa [#allocation3], 0  ;;  %s150_s0 = inlined_call_operand.hbm [shape: f32[1,2048], index: 0, kind: input, shape index: {}]   ;;  %s151_s1 = inlined_call_operand.hbm [shape: f32[1,2048], index: 1, kind: output, shape index: {}]  }
   0x1   :  { %7 = vsyncpa [#allocation4], 0  ;;  %s114_s6 = smov [#allocation2]   ;;  %s66_s10 = scalar_lea.hbm %s150_s0, 256 }
   0x2   :  { %s14_s7 = sshll.u32 %s114_s6, 4  ;;  %p67_p0 = scmp.ne.s32.totalorder %s150_s0, %s66_s10  ;;  %s15_s7 = int_to_ptr.vmem [resolvable:$true] %s14_s7 }
   0x3   :  { %p70_p1 = scmp.lt.u32.totalorder %s66_s10, %s150_s0 }
   0x5   :  { %p72_p2 = pnand %p70_p1, %p67_p0 }
   0x7   :  { %75 = shalt.err (!%p72_p2)
}
   0x8   :  { %s76_s15 = scalar_lea.vmem %s15_s7, 256  ;;  %p81_p4 = scmp.lt.s32.totalorder %s15_s7, %s15_s7 }
   0x9   :  { %p77_p3 = scmp.ne.s32.totalorder %s15_s7, %s76_s15  ;;  %p82_p5 = scmp.lt.s32.totalorder %s76_s15, %s76_s15 }
   0xb   :  { %p83_p6 = por %p82_p5, %p81_p4 }
   0xd   :  { %p84_p7 = pnand %p83_p6, %p77_p3 }
   0xf   :  { %87 = shalt.err (!%p84_p7)
}
  0x10   :  { %17 = dma.hbm_to_vmem [thread:$0]  %s150_s0, 256, %s15_s7, [#allocation3]  }
  0x11   :  { %110 = dma.done.wait [#allocation3], 256  }
  0x12   :  { %111 = vsyncadd [#allocation3], 4294967040  ;;  %v21_v0 = vld [vmem:[#allocation2] sm:$0xff]  ;;  %v22_v1 = vld [vmem:[#allocation2 + $0x8] sm:$0xff]  ;;  %s115_s18 = smov [#allocation5]  }
  0x13   :  { %v54_v2 = vmul.f32 -1.442695, %v21_v0  ;;  %v55_v3 = vmul.f32 -1.442695, %v22_v1  ;;  %s45_s19 = sshll.u32 %s115_s18, 4  ;;  %s46_s19 = int_to_ptr.vmem [resolvable:$true] %s45_s19 }
  0x14   :  { %s88_s0 = scalar_lea.vmem %s46_s19, 256  ;;  %p93_p9 = scmp.lt.s32.totalorder %s46_s19, %s46_s19 }
  0x15   :  { %58 = vpow2.f32 %v54_v2  ;;  %p89_p8 = scmp.ne.s32.totalorder %s46_s19, %s88_s0  ;;  %p94_p10 = scmp.lt.s32.totalorder %s88_s0, %s88_s0 }
  0x16   :  { %60 = vpow2.f32 %v55_v3 }
  0x17   :  { %p95_p11 = por %p94_p10, %p93_p9 }
  0x19   :  { %p96_p12 = pnand %p95_p11, %p89_p8 }
  0x1f   :  { %v59_v4 = vpop.eup %58 }
  0x20   :  { %v61_v5 = vpop.eup %60  ;;  %v29_v6 = vadd.f32 1.0, %v59_v4 }
  0x21   :  { %v30_v7 = vadd.f32 1.0, %v61_v5 }
  0x22   :  { %62 = vrcp.f32 %v29_v6 }
  0x23   :  { %64 = vrcp.f32 %v30_v7 }
  0x2c   :  { %v63_v8 = vpop.eup %62 }
  0x2d   :  { %v65_v9 = vpop.eup %64  ;;  %v35_v10 = vmul.f32 %v63_v8, %v21_v0 }
  0x2e   :  { %v36_v11 = vmul.f32 %v65_v9, %v22_v1 }
  0x2f   :  { %37 = vst [vmem:[#allocation5] sm:$0xff] %v35_v10 }
  0x30   :  { %38 = vst [vmem:[#allocation5 + $0x8] sm:$0xff] %v36_v11 }
  0x31   :  { %99 = shalt.err (!%p96_p12)
}
  0x32   :  { %s100_s22 = scalar_lea.hbm %s151_s1, 256 }
  0x33   :  { %p101_p13 = scmp.ne.s32.totalorder %s151_s1, %s100_s22  ;;  %p104_p0 = scmp.lt.u32.totalorder %s100_s22, %s151_s1 }
  0x35   :  { %p106_p1 = pnand %p104_p0, %p101_p13 }
  0x37   :  { %109 = shalt.err (!%p106_p1)
}
  0x38   :  { %48 = dma.vmem_to_hbm [thread:$0]  %s46_s19, 256, %s151_s1, [#allocation4]  }
  0x39   :  { %112 = dma.done.wait [#allocation4], 256  }
  0x3a   :  { %113 = vsyncadd [#allocation4], 4294967040 }
  0x3b   :  { %52 = vsyncpa [#allocation3], 1 }
  0x3c   :  { %53 = vsyncpa [#allocation4], 1 }

</bundles_post_ra>
